<compile_context>
chip_gen: v5e
topology: v5e:2x2
jax: 0.10.0
libtpu: 0.0.40
codegen_flags: <defaults>
</compile_context>

<pallas_src>
import jax
import jax.numpy as jnp
from jax.experimental import pallas as pl
from jax.experimental.pallas import tpu as pltpu

# Module "parameters" (no learnable weights in this module).
JACCARD_WEIGHT = 0.5
DICE_WEIGHT = 0.5
SMOOTH = 0.0   # smp default
EPS = 1e-7     # smp default

_ROW_ALIGN = 32  # sublane rows per tile multiple: dense for f32/bf16 logits & int8 labels


def _make_kernel(num_classes, needs_mask):
    """Build the per-tile reduction kernel (static closure over C / padding flag)."""

    def kernel(logits_ref, labels_ref, acc_ref, inter_s, pred_s, true_s):
        # logits_ref: (C, TR, 128) raw logits (classes = leading dim, pixels dense)
        # labels_ref: (TR, 128)    int8/int32 labels; padded pixels carry label == C
        # acc_ref:    (C, 3)       written once per (batch, partition) at the last tile
        # *_s:        (C, 8, 128)  f32 VMEM partial-sum scratch
        t = pl.program_id(2)

        @pl.when(t == 0)
        def _init():
            inter_s[...] = jnp.zeros_like(inter_s)
            pred_s[...] = jnp.zeros_like(pred_s)
            true_s[...] = jnp.zeros_like(true_s)

        x = logits_ref[...].astype(jnp.float32)            # (C, TR, 128)
        c, tr, _ = x.shape

        # Per-pixel softmax over the class (leading) axis: C-way elementwise
        # max/add over dense (TR,128) slabs -> pure VPU; exp on EUP.
        m = jnp.max(x, axis=0)                              # (TR, 128)
        e = jnp.exp(x - m[None, :, :])                      # (C, TR, 128)
        denom = jnp.sum(e, axis=0)                          # (TR, 128)
        inv = pl.reciprocal(denom, approx=True)             # EUP slot
        inv = inv * (2.0 - denom * inv)                     # one Newton step -> f32 exact

        labels = labels_ref[...].astype(jnp.int32)          # (TR, 128)
        if needs_mask:
            # Padded pixels (label == C) contribute zero softmax mass / one-hot.
            # (Genuinely out-of-range labels are undefined behavior in smp as well.)
            inv = jnp.where(labels < num_classes, inv, 0.0)

        p = e * inv[None, :, :]                             # (C, TR, 128)
        cls_ids = jax.lax.broadcasted_iota(jnp.int32, (c, tr, 128), 0)
        onehot = (cls_ids == labels[None, :, :]).astype(jnp.float32)

        # Deferred spatial reduction: vreg-wise adds into (C, 8, 128) partials
        # (reshape does not cross (8,128) tile boundaries -> free).
        nrv = tr // 8
        inter_s[...] += jnp.sum((p * onehot).reshape(c, nrv, 8, 128), axis=1)
        pred_s[...] += jnp.sum(p.reshape(c, nrv, 8, 128), axis=1)
        true_s[...] += jnp.sum(onehot.reshape(c, nrv, 8, 128), axis=1)

        @pl.when(t == pl.num_programs(2) - 1)
        def _finalize():
            def collapse(v):                                 # (C,8,128) -> (C,1)
                r0 = jnp.sum(v, axis=1)                      # sublane reduce (XLU, once)
                return jnp.sum(r0, axis=-1, keepdims=True)   # lane reduce (XLU, once)

            acc_ref[...] = jnp.concatenate(
                [collapse(inter_s[...]),
                 collapse(pred_s[...]),
                 collapse(true_s[...])], axis=-1)            # (C, 3)

    return kernel


def _npart_for_device():
    """Use 2 spatial partitions only on v7x (2 TensorCores); 1 elsewhere."""
    try:
        kind = jax.devices()[0].device_kind.lower()
    except Exception:
        return 1
    return 2 if ("v7" in kind or "tpu7" in kind) else 1


def jaccard_dice_loss(outputs, targets,
                      jaccard_weight=JACCARD_WEIGHT,
                      dice_weight=DICE_WEIGHT,
                      target_block_bytes=512 * 1024):
    """outputs: (N, C, H, W) logits;  targets: (N, H, W) int labels.  Returns scalar."""
    n, c, h, w = outputs.shape
    s = h * w
    itemsize = jnp.dtype(outputs.dtype).itemsize

    r = -(-s // 128)                                   # rows of 128 lanes
    npart = _npart_for_device() if r >= 2 * _ROW_ALIGN else 1
    rows_per_part = -(-r // npart)

    # TR rows per tile: ~target_block_bytes of logits per block, multiple of 32 rows.
    tr_cap = max(_ROW_ALIGN,
                 (target_block_bytes // (c * 128 * itemsize)) // _ROW_ALIGN * _ROW_ALIGN)
    tr = min(tr_cap, -(-rows_per_part // _ROW_ALIGN) * _ROW_ALIGN)
    tiles_per_part = -(-rows_per_part // tr)
    r_pad = npart * tiles_per_part * tr
    s_pad = r_pad * 128
    needs_mask = (s_pad != s)

    label_dtype = jnp.int8 if c < 128 else jnp.int32   # 4x smaller label reads for small C
    logits = outputs.reshape(n, c, s)                  # free reshape (native NCHW layout)
    labels = targets.reshape(n, s).astype(label_dtype)
    if needs_mask:
        logits = jnp.pad(logits, ((0, 0), (0, 0), (0, s_pad - s)))
        labels = jnp.pad(labels, ((0, 0), (0, s_pad - s)), constant_values=c)
    logits = logits.reshape(n, c, r_pad, 128)          # free split of the minor dim
    labels = labels.reshape(n, r_pad, 128)

    kernel = _make_kernel(c, needs_mask)

    cost = pl.CostEstimate(
        flops=int(8 * n * c * s),
        transcendentals=int(n * s * (c + 1)),
        bytes_accessed=int(n * s * (c * itemsize + jnp.dtype(label_dtype).itemsize)
                           + n * npart * c * 3 * 4),
    )

    acc = pl.pallas_call(
        kernel,
        out_shape=jax.ShapeDtypeStruct((n, npart, c, 3), jnp.float32),
        grid_spec=pltpu.PrefetchScalarGridSpec(
            num_scalar_prefetch=0,
            grid=(n, npart, tiles_per_part),
            in_specs=[
                pl.BlockSpec((None, c, tr, 128),
                             lambda nb, pp, t: (nb, 0, pp * tiles_per_part + t, 0)),
                pl.BlockSpec((None, tr, 128),
                             lambda nb, pp, t: (nb, pp * tiles_per_part + t, 0)),
            ],
            out_specs=pl.BlockSpec((None, None, c, 3),
                                   lambda nb, pp, t: (nb, pp, 0, 0)),
            scratch_shapes=[
                pltpu.VMEM((c, 8, 128), jnp.float32),   # intersection partials
                pltpu.VMEM((c, 8, 128), jnp.float32),   # predicted-mass partials
                pltpu.VMEM((c, 8, 128), jnp.float32),   # true-count partials
            ],
        ),
        compiler_params=pltpu.CompilerParams(
            dimension_semantics=("parallel", "parallel", "arbitrary"),
            vmem_limit_bytes=32 * 1024 * 1024,
        ),
        cost_estimate=cost,
    )(logits, labels)

    # Tiny per-class epilogue in plain JAX (combines batch / partition partials).
    sums = jnp.sum(acc, axis=(0, 1))        # (C, 3)
    inter = sums[:, 0]                      # sum of softmax * onehot
    pred_sum = sums[:, 1]                   # sum of softmax (padded pixels excluded in-kernel)
    true_sum = sums[:, 2]                   # per-class true pixel count

    cardinality = pred_sum + true_sum
    union = cardinality - inter

    # smp soft_jaccard_score / soft_dice_score with dims=(0,2), smooth=0, eps=1e-7
    jaccard_score = (inter + SMOOTH) / jnp.maximum(union + SMOOTH, EPS)
    dice_score = (2.0 * inter + SMOOTH) / jnp.maximum(cardinality + SMOOTH, EPS)

    mask = (true_sum > 0).astype(jnp.float32)   # zero out classes absent from y_true
    jaccard_l = jnp.mean((1.0 - jaccard_score) * mask)
    dice_l = jnp.mean((1.0 - dice_score) * mask)
    return jaccard_weight * jaccard_l + dice_weight * dice_l


def _reference_loss(outputs, targets,
                    jaccard_weight=JACCARD_WEIGHT, dice_weight=DICE_WEIGHT):
    """Pure-JAX reference reproducing smp Jaccard/Dice multiclass-from-logits."""
    n, c, h, w = outputs.shape
    p = jax.nn.softmax(outputs.astype(jnp.float32), axis=1)       # (N,C,H,W)
    onehot = jax.nn.one_hot(targets, c, dtype=jnp.float32)        # (N,H,W,C)
    onehot = jnp.transpose(onehot, (0, 3, 1, 2))                  # (N,C,H,W)
    dims = (0, 2, 3)
    inter = jnp.sum(p * onehot, axis=dims)
    card = jnp.sum(p + onehot, axis=dims)
    union = card - inter
    jac = (inter + SMOOTH) / jnp.maximum(union + SMOOTH, EPS)
    dic = (2 * inter + SMOOTH) / jnp.maximum(card + SMOOTH, EPS)
    mask = (jnp.sum(onehot, axis=dims) > 0).astype(jnp.float32)
    return (jaccard_weight * jnp.mean((1 - jac) * mask)
            + dice_weight * jnp.mean((1 - dic) * mask))


if __name__ == "__main__":
    key = jax.random.PRNGKey(0)
    k1, k2 = jax.random.split(key)
    N, C, H, W = 2, 4, 16, 16
    outputs = jax.random.normal(k1, (N, C, H, W), dtype=jnp.float32)
    targets = jax.random.randint(k2, (N, H, W), 0, C, dtype=jnp.int32)

    loss = jax.jit(jaccard_dice_loss)(outputs, targets)
    jax.block_until_ready(loss)

    ref = _reference_loss(outputs, targets)
    assert jnp.allclose(loss, ref, rtol=1e-5, atol=1e-6), (loss, ref)

    print("KERNEL_OK")
</pallas_src>

<mosaic_0001>
module attributes {stable_mosaic.version = 11 : i64} {
  func.func @kernel(%arg0: i32, %arg1: i32, %arg2: i32, %arg3: memref<1x4x32x128xf32, #tpu.memory_space<vmem>>, %arg4: memref<1x32x128xi8, #tpu.memory_space<vmem>>, %arg5: memref<1x1x4x3xf32, #tpu.memory_space<vmem>>, %arg6: memref<4x8x128xf32, #tpu.memory_space<vmem>>, %arg7: memref<4x8x128xf32, #tpu.memory_space<vmem>>, %arg8: memref<4x8x128xf32, #tpu.memory_space<vmem>>) attributes {dimension_semantics = [#tpu.dimension_semantics<parallel>, #tpu.dimension_semantics<parallel>, #tpu.dimension_semantics<arbitrary>], iteration_bounds = array<i64: 2, 1, 1>, scalar_prefetch = 0 : i64, scratch_operands = 3 : i64, tpu.core_type = #tpu.core_type<tc>, window_params = [{transform_indices = @transform_0, window_bounds = array<i64: 1, 4, 32, 128>}, {transform_indices = @transform_1, window_bounds = array<i64: 1, 32, 128>}, {transform_indices = @transform_2, window_bounds = array<i64: 1, 1, 4, 3>}]} {
    %c0_i32 = arith.constant 0 : i32
    %0 = arith.cmpi eq, %arg2, %c0_i32 : i32
    %1 = arith.extui %0 : i1 to i32
    %c0_i32_0 = arith.constant 0 : i32
    %2 = arith.cmpi ne, %1, %c0_i32_0 : i32
    scf.if %2 {
      %cst_33 = arith.constant 0.000000e+00 : f32
      %51 = vector.broadcast %cst_33 : f32 to vector<4x8x128xf32>
      %c0_34 = arith.constant 0 : index
      %c0_35 = arith.constant 0 : index
      %c0_36 = arith.constant 0 : index
      %52 = vector.load %arg6[%c0_34, %c0_35, %c0_36] : memref<4x8x128xf32, #tpu.memory_space<vmem>>, vector<4x8x128xf32>
      tpu.vector_store %arg6[%c0_34, %c0_35, %c0_36], %51 {strides = array<i32>} : memref<4x8x128xf32, #tpu.memory_space<vmem>>, vector<4x8x128xf32>,
      %cst_37 = arith.constant 0.000000e+00 : f32
      %53 = vector.broadcast %cst_37 : f32 to vector<4x8x128xf32>
      %c0_38 = arith.constant 0 : index
      %c0_39 = arith.constant 0 : index
      %c0_40 = arith.constant 0 : index
      %54 = vector.load %arg7[%c0_38, %c0_39, %c0_40] : memref<4x8x128xf32, #tpu.memory_space<vmem>>, vector<4x8x128xf32>
      tpu.vector_store %arg7[%c0_38, %c0_39, %c0_40], %53 {strides = array<i32>} : memref<4x8x128xf32, #tpu.memory_space<vmem>>, vector<4x8x128xf32>,
      %cst_41 = arith.constant 0.000000e+00 : f32
      %55 = vector.broadcast %cst_41 : f32 to vector<4x8x128xf32>
      %c0_42 = arith.constant 0 : index
      %c0_43 = arith.constant 0 : index
      %c0_44 = arith.constant 0 : index
      %56 = vector.load %arg8[%c0_42, %c0_43, %c0_44] : memref<4x8x128xf32, #tpu.memory_space<vmem>>, vector<4x8x128xf32>
      tpu.vector_store %arg8[%c0_42, %c0_43, %c0_44], %55 {strides = array<i32>} : memref<4x8x128xf32, #tpu.memory_space<vmem>>, vector<4x8x128xf32>,
    } else {
    }
    %c0 = arith.constant 0 : index
    %c0_1 = arith.constant 0 : index
    %c0_2 = arith.constant 0 : index
    %c0_3 = arith.constant 0 : index
    %3 = vector.load %arg3[%c0, %c0_1, %c0_2, %c0_3] : memref<1x4x32x128xf32, #tpu.memory_space<vmem>>, vector<1x4x32x128xf32>
    %4 = vector.shape_cast %3 : vector<1x4x32x128xf32> to vector<4x32x128xf32>
    %cst = arith.constant dense<0xFF800000> : vector<32x128xf32>
    %5 = vector.multi_reduction <maximumf>, %4, %cst [0] : vector<4x32x128xf32> to vector<32x128xf32>
    %6 = vector.shape_cast %5 : vector<32x128xf32> to vector<1x32x128xf32>
    %7 = vector.broadcast %6 : vector<1x32x128xf32> to vector<4x32x128xf32>
    %8 = arith.subf %4, %7 : vector<4x32x128xf32>
    %9 = math.exp %8 : vector<4x32x128xf32>
    %cst_4 = arith.constant dense<0.000000e+00> : vector<32x128xf32>
    %10 = vector.multi_reduction <add>, %9, %cst_4 [0] : vector<4x32x128xf32> to vector<32x128xf32>
    %11 = tpu.reciprocal %10 {approx = true} : vector<32x128xf32> -> vector<32x128xf32>
    %12 = arith.mulf %10, %11 : vector<32x128xf32>
    %cst_5 = arith.constant 2.000000e+00 : f32
    %13 = vector.broadcast %cst_5 : f32 to vector<32x128xf32>
    %14 = arith.subf %13, %12 : vector<32x128xf32>
    %15 = arith.mulf %11, %14 : vector<32x128xf32>
    %c0_6 = arith.constant 0 : index
    %c0_7 = arith.constant 0 : index
    %c0_8 = arith.constant 0 : index
    %16 = vector.load %arg4[%c0_6, %c0_7, %c0_8] : memref<1x32x128xi8, #tpu.memory_space<vmem>>, vector<1x32x128xi8>
    %17 = vector.shape_cast %16 : vector<1x32x128xi8> to vector<32x128xi8>
    %18 = arith.extsi %17 : vector<32x128xi8> to vector<32x128xi32>
    %c4_i32 = arith.constant 4 : i32
    %19 = vector.broadcast %c4_i32 : i32 to vector<32x128xi32>
    %20 = arith.cmpi slt, %18, %19 : vector<32x128xi32>
    %cst_9 = arith.constant 0.000000e+00 : f32
    %21 = vector.broadcast %cst_9 : f32 to vector<32x128xf32>
    %22 = arith.select %20, %15, %21 : vector<32x128xi1>, vector<32x128xf32>
    %23 = vector.shape_cast %22 : vector<32x128xf32> to vector<1x32x128xf32>
    %24 = vector.broadcast %23 : vector<1x32x128xf32> to vector<4x32x128xf32>
    %25 = arith.mulf %9, %24 : vector<4x32x128xf32>
    %26 = tpu.iota {dimensions = array<i32: 0>} : vector<4x32x128xi32>
    %27 = vector.shape_cast %18 : vector<32x128xi32> to vector<1x32x128xi32>
    %28 = vector.broadcast %27 : vector<1x32x128xi32> to vector<4x32x128xi32>
    %29 = arith.cmpi eq, %26, %28 : vector<4x32x128xi32>
    %30 = arith.extui %29 : vector<4x32x128xi1> to vector<4x32x128xi32>
    %31 = arith.sitofp %30 : vector<4x32x128xi32> to vector<4x32x128xf32>
    %c0_10 = arith.constant 0 : index
    %c0_11 = arith.constant 0 : index
    %c0_12 = arith.constant 0 : index
    %32 = vector.load %arg6[%c0_10, %c0_11, %c0_12] : memref<4x8x128xf32, #tpu.memory_space<vmem>>, vector<4x8x128xf32>
    %33 = arith.mulf %25, %31 : vector<4x32x128xf32>
    %34 = vector.shape_cast %33 : vector<4x32x128xf32> to vector<4x4x8x128xf32>
    %cst_13 = arith.constant dense<0.000000e+00> : vector<4x8x128xf32>
    %35 = vector.multi_reduction <add>, %34, %cst_13 [1] : vector<4x4x8x128xf32> to vector<4x8x128xf32>
    %36 = arith.addf %32, %35 : vector<4x8x128xf32>
    %c0_14 = arith.constant 0 : index
    %c0_15 = arith.constant 0 : index
    %c0_16 = arith.constant 0 : index
    %37 = vector.load %arg6[%c0_14, %c0_15, %c0_16] : memref<4x8x128xf32, #tpu.memory_space<vmem>>, vector<4x8x128xf32>
    tpu.vector_store %arg6[%c0_14, %c0_15, %c0_16], %36 {strides = array<i32>} : memref<4x8x128xf32, #tpu.memory_space<vmem>>, vector<4x8x128xf32>,
    %c0_17 = arith.constant 0 : index
    %c0_18 = arith.constant 0 : index
    %c0_19 = arith.constant 0 : index
    %38 = vector.load %arg7[%c0_17, %c0_18, %c0_19] : memref<4x8x128xf32, #tpu.memory_space<vmem>>, vector<4x8x128xf32>
    %39 = vector.shape_cast %25 : vector<4x32x128xf32> to vector<4x4x8x128xf32>
    %cst_20 = arith.constant dense<0.000000e+00> : vector<4x8x128xf32>
    %40 = vector.multi_reduction <add>, %39, %cst_20 [1] : vector<4x4x8x128xf32> to vector<4x8x128xf32>
    %41 = arith.addf %38, %40 : vector<4x8x128xf32>
    %c0_21 = arith.constant 0 : index
    %c0_22 = arith.constant 0 : index
    %c0_23 = arith.constant 0 : index
    %42 = vector.load %arg7[%c0_21, %c0_22, %c0_23] : memref<4x8x128xf32, #tpu.memory_space<vmem>>, vector<4x8x128xf32>
    tpu.vector_store %arg7[%c0_21, %c0_22, %c0_23], %41 {strides = array<i32>} : memref<4x8x128xf32, #tpu.memory_space<vmem>>, vector<4x8x128xf32>,
    %c0_24 = arith.constant 0 : index
    %c0_25 = arith.constant 0 : index
    %c0_26 = arith.constant 0 : index
    %43 = vector.load %arg8[%c0_24, %c0_25, %c0_26] : memref<4x8x128xf32, #tpu.memory_space<vmem>>, vector<4x8x128xf32>
    %44 = vector.shape_cast %31 : vector<4x32x128xf32> to vector<4x4x8x128xf32>
    %cst_27 = arith.constant dense<0.000000e+00> : vector<4x8x128xf32>
    %45 = vector.multi_reduction <add>, %44, %cst_27 [1] : vector<4x4x8x128xf32> to vector<4x8x128xf32>
    %46 = arith.addf %43, %45 : vector<4x8x128xf32>
    %c0_28 = arith.constant 0 : index
    %c0_29 = arith.constant 0 : index
    %c0_30 = arith.constant 0 : index
    %47 = vector.load %arg8[%c0_28, %c0_29, %c0_30] : memref<4x8x128xf32, #tpu.memory_space<vmem>>, vector<4x8x128xf32>
    tpu.vector_store %arg8[%c0_28, %c0_29, %c0_30], %46 {strides = array<i32>} : memref<4x8x128xf32, #tpu.memory_space<vmem>>, vector<4x8x128xf32>,
    %c0_i32_31 = arith.constant 0 : i32
    %48 = arith.cmpi eq, %arg2, %c0_i32_31 : i32
    %49 = arith.extui %48 : i1 to i32
    %c0_i32_32 = arith.constant 0 : i32
    %50 = arith.cmpi ne, %49, %c0_i32_32 : i32
    scf.if %50 {
      %c0_33 = arith.constant 0 : index
      %c0_34 = arith.constant 0 : index
      %c0_35 = arith.constant 0 : index
      %51 = vector.load %arg6[%c0_33, %c0_34, %c0_35] : memref<4x8x128xf32, #tpu.memory_space<vmem>>, vector<4x8x128xf32>
      %cst_36 = arith.constant dense<0.000000e+00> : vector<4x128xf32>
      %52 = vector.multi_reduction <add>, %51, %cst_36 [1] : vector<4x8x128xf32> to vector<4x128xf32>
      %cst_37 = arith.constant dense<0.000000e+00> : vector<4xf32>
      %53 = vector.multi_reduction <add>, %52, %cst_37 [1] : vector<4x128xf32> to vector<4xf32>
      %54 = vector.shape_cast %53 : vector<4xf32> to vector<4x1xf32>
      %c0_38 = arith.constant 0 : index
      %c0_39 = arith.constant 0 : index
      %c0_40 = arith.constant 0 : index
      %55 = vector.load %arg7[%c0_38, %c0_39, %c0_40] : memref<4x8x128xf32, #tpu.memory_space<vmem>>, vector<4x8x128xf32>
      %cst_41 = arith.constant dense<0.000000e+00> : vector<4x128xf32>
      %56 = vector.multi_reduction <add>, %55, %cst_41 [1] : vector<4x8x128xf32> to vector<4x128xf32>
      %cst_42 = arith.constant dense<0.000000e+00> : vector<4xf32>
      %57 = vector.multi_reduction <add>, %56, %cst_42 [1] : vector<4x128xf32> to vector<4xf32>
      %58 = vector.shape_cast %57 : vector<4xf32> to vector<4x1xf32>
      %c0_43 = arith.constant 0 : index
      %c0_44 = arith.constant 0 : index
      %c0_45 = arith.constant 0 : index
      %59 = vector.load %arg8[%c0_43, %c0_44, %c0_45] : memref<4x8x128xf32, #tpu.memory_space<vmem>>, vector<4x8x128xf32>
      %cst_46 = arith.constant dense<0.000000e+00> : vector<4x128xf32>
      %60 = vector.multi_reduction <add>, %59, %cst_46 [1] : vector<4x8x128xf32> to vector<4x128xf32>
      %cst_47 = arith.constant dense<0.000000e+00> : vector<4xf32>
      %61 = vector.multi_reduction <add>, %60, %cst_47 [1] : vector<4x128xf32> to vector<4xf32>
      %62 = vector.shape_cast %61 : vector<4xf32> to vector<4x1xf32>
      %63 = tpu.concatenate %54, %58, %62 in 1 : vector<4x1xf32>, vector<4x1xf32>, vector<4x1xf32> -> vector<4x3xf32>
      %c0_48 = arith.constant 0 : index
      %c0_49 = arith.constant 0 : index
      %c0_50 = arith.constant 0 : index
      %c0_51 = arith.constant 0 : index
      %64 = vector.load %arg5[%c0_48, %c0_49, %c0_50, %c0_51] : memref<1x1x4x3xf32, #tpu.memory_space<vmem>>, vector<1x1x4x3xf32>
      %65 = vector.shape_cast %64 : vector<1x1x4x3xf32> to vector<4x3xf32>
      %66 = vector.shape_cast %63 : vector<4x3xf32> to vector<1x1x4x3xf32>
      tpu.vector_store %arg5[%c0_48, %c0_49, %c0_50, %c0_51], %66 {strides = array<i32>} : memref<1x1x4x3xf32, #tpu.memory_space<vmem>>, vector<1x1x4x3xf32>,
    } else {
    }
    return
  }
  func.func @transform_0(%arg0: i32, %arg1: i32, %arg2: i32) -> (i32, i32, i32, i32) {
    %c1_i32 = arith.constant 1 : i32
    %0 = arith.muli %arg1, %c1_i32 : i32
    %1 = arith.addi %0, %arg2 : i32
    %c0_i32 = arith.constant 0 : i32
    %c0_i32_0 = arith.constant 0 : i32
    %c0_i32_1 = arith.constant 0 : i32
    return %arg0, %c0_i32, %1, %c0_i32_0 : i32, i32, i32, i32
  }
  func.func @transform_1(%arg0: i32, %arg1: i32, %arg2: i32) -> (i32, i32, i32) {
    %c1_i32 = arith.constant 1 : i32
    %0 = arith.muli %arg1, %c1_i32 : i32
    %1 = arith.addi %0, %arg2 : i32
    %c0_i32 = arith.constant 0 : i32
    %c0_i32_0 = arith.constant 0 : i32
    return %arg0, %1, %c0_i32 : i32, i32, i32
  }
  func.func @transform_2(%arg0: i32, %arg1: i32, %arg2: i32) -> (i32, i32, i32, i32) {
    %c0_i32 = arith.constant 0 : i32
    %c0_i32_0 = arith.constant 0 : i32
    %c0_i32_1 = arith.constant 0 : i32
    return %arg0, %arg1, %c0_i32, %c0_i32_0 : i32, i32, i32, i32
  }
}

</mosaic_0001>

<bundles_post_ra>
// kernel: jaccard_dice_loss.1
= control target key start
LH: loop header
LB: loop body
LE: loop exit
PB: predicated region body
PF: predicated region fallthrough
CT: control target
= control target key end

     0   :  { %s870_s9 = smov 0   ;;  %s872_s10 = smov 0   ;;  %s1133_s0 = inlined_call_operand.vmem [shape: f32[2,4,32,128], index: 0, kind: input, shape index: {}]   ;;  %s1134_s1 = inlined_call_operand.vmem [shape: s8[2,32,128], index: 1, kind: input, shape index: {}]   ;;  %s1135_s2 = inlined_call_operand.vmem [shape: f32[2,1,4,3], index: 2, kind: output, shape index: {}]  }
   0x1   :  { %s874_s11 = smov 0  }
   0x2 LB: > { %s31_s12 = sadd.s32 1, %s848_s10  ;;  %p741_p0 = scmp.ge.s32.totalorder %s852_s11, 1  ;;  %s852_s11 = sphi %s874_s11, %s12_s11   ;;  %s848_s10 = sphi %s872_s10, %s1137_s10   ;;  %s844_s9 = sphi %s870_s9, %s1136_s9  }
   0x3   : > { %p33_p1 = scmp.ge.s32.totalorder %s31_s12, 2  ;;  %p162_p2 = scmp.lt.s32.totalorder %s852_s11, 3 }
   0x5   : > { %s1139_s12 = smov (%p33_p1, %s31_s12), 0  ;;  %p163_p3 = pnand %p741_p0, %p162_p2 }
   0x6   : > { %p201_p4 = scmp.lt.s32.totalorder (!%p163_p3), %s844_s9, 1 }
   0x7   : > { %166 = sbr.rel (%p163_p3) target bundleno = 220 (0xdc), region = 28 }
   0xc   : > { %s1141_s9 = smov (!%p201_p4, %s844_s9), 1 }
   0xd   : > { %s764_s13 = sshll.u32 %s1141_s9, 7  ;;  %s744_s17 = sshll.u32 %s1141_s9, 3 }
   0xe   : > { %s208_s16 = scalar_lea.vmem %s1133_s0, %s764_s13  ;;  %s218_s20 = scalar_lea.vmem %s1134_s1, %s744_s17 }
   0xf   : > { %v243_v0 = vld [vmem:[%s208_s16] sm:$0xff]  ;;  %v244_v1 = vld [vmem:[%s208_s16 + $0x8] sm:$0xff]  ;;  %v245_v2 = vld [vmem:[%s208_s16 + $0x10] sm:$0xff]  ;;  %s745_s21 = sshll.u32 %s1141_s9, 2 }
  0x10   : > { %v246_v3 = vld [vmem:[%s208_s16 + $0x18] sm:$0xff]  ;;  %v247_v4 = vld [vmem:[%s208_s16 + $0x20] sm:$0xff]  ;;  %v248_v5 = vld [vmem:[%s208_s16 + $0x28] sm:$0xff]  ;;  %s226_s24 = scalar_lea.vmem %s1135_s2, %s745_s21 }
  0x11   : > { %v249_v6 = vld [vmem:[%s208_s16 + $0x30] sm:$0xff]  ;;  %v250_v7 = vld [vmem:[%s208_s16 + $0x38] sm:$0xff]  ;;  %v251_v8 = vld [vmem:[%s208_s16 + $0x40] sm:$0xff]  ;;  %v259_v9 = vmax.f32 %v243_v0, %v247_v4  ;;  %v262_v10 = vmax.f32 %v244_v1, %v248_v5 }
  0x12   : > { %v252_v11 = vld [vmem:[%s208_s16 + $0x48] sm:$0xff]  ;;  %v253_v12 = vld [vmem:[%s208_s16 + $0x50] sm:$0xff]  ;;  %v254_v13 = vld [vmem:[%s208_s16 + $0x58] sm:$0xff]  ;;  %v265_v14 = vmax.f32 %v245_v2, %v249_v6  ;;  %v268_v15 = vmax.f32 %v246_v3, %v250_v7 }
  0x13   : > { %v255_v16 = vld [vmem:[%s208_s16 + $0x60] sm:$0xff]  ;;  %v256_v17 = vld [vmem:[%s208_s16 + $0x68] sm:$0xff]  ;;  %v257_v18 = vld [vmem:[%s208_s16 + $0x70] sm:$0xff]  ;;  %v260_v19 = vmax.f32 %v259_v9, %v251_v8  ;;  %v263_v20 = vmax.f32 %v262_v10, %v252_v11 }
  0x14   : > { %v258_v21 = vld [vmem:[%s208_s16 + $0x78] sm:$0xff]  ;;  %v266_v22 = vmax.f32 %v265_v14, %v253_v12  ;;  %v269_v23 = vmax.f32 %v268_v15, %v254_v13  ;;  %v347_v56 = vld [vmem:[%s218_s20] sm:$0xff] }
  0x15   : > { %v261_v24 = vmax.f32 %v260_v19, %v255_v16  ;;  %v264_v25 = vmax.f32 %v263_v20, %v256_v17  ;;  %v854_v20 = vmov 0.0  }
  0x16   : > { %v267_v26 = vmax.f32 %v266_v22, %v257_v18  ;;  %v270_v27 = vmax.f32 %v269_v23, %v258_v21 }
  0x17   : > { %v271_v28 = vsub.f32 %v243_v0, %v261_v24  ;;  %v272_v29 = vsub.f32 %v244_v1, %v264_v25  ;;  %v275_v32 = vsub.f32 %v247_v4, %v261_v24  ;;  %v276_v33 = vsub.f32 %v248_v5, %v264_v25 }
  0x18   : > { %v273_v30 = vsub.f32 %v245_v2, %v267_v26  ;;  %v274_v31 = vsub.f32 %v246_v3, %v270_v27  ;;  %v277_v34 = vsub.f32 %v249_v6, %v267_v26  ;;  %v278_v38 = vsub.f32 %v250_v7, %v270_v27 }
  0x19   : > { %v287_v35 = vmul.f32 1.442695, %v271_v28  ;;  %v289_v36 = vmul.f32 1.442695, %v272_v29  ;;  %v279_v40 = vsub.f32 %v251_v8, %v261_v24  ;;  %v295_v41 = vmul.f32 1.442695, %v275_v32 }
  0x1a   : > { %v291_v37 = vmul.f32 1.442695, %v273_v30  ;;  %v293_v39 = vmul.f32 1.442695, %v274_v31  ;;  %v280_v42 = vsub.f32 %v252_v11, %v264_v25  ;;  %v297_v43 = vmul.f32 1.442695, %v276_v33 }
  0x1b   : > { %790 = vpow2.f32 %v287_v35  ;;  %v281_v44 = vsub.f32 %v253_v12, %v267_v26  ;;  %v299_v45 = vmul.f32 1.442695, %v277_v34  ;;  %v282_v46 = vsub.f32 %v254_v13, %v270_v27 }
  0x1c   : > { %792 = vpow2.f32 %v289_v36  ;;  %v301_v47 = vmul.f32 1.442695, %v278_v38  ;;  %v283_v48 = vsub.f32 %v255_v16, %v261_v24  ;;  %v284_v49 = vsub.f32 %v256_v17, %v264_v25 }
  0x1d   : > { %794 = vpow2.f32 %v291_v37  ;;  %v303_v50 = vmul.f32 1.442695, %v279_v40  ;;  %v285_v51 = vsub.f32 %v257_v18, %v267_v26  ;;  %v286_v52 = vsub.f32 %v258_v21, %v270_v27 }
  0x1e   : > { %796 = vpow2.f32 %v293_v39  ;;  %v305_v53 = vmul.f32 1.442695, %v280_v42  ;;  %v307_v55 = vmul.f32 1.442695, %v281_v44  ;;  %v309_v58 = vmul.f32 1.442695, %v282_v46 }
  0x1f   : > { %798 = vpow2.f32 %v295_v41  ;;  %v311_v60 = vmul.f32 1.442695, %v283_v48  ;;  %v313_v61 = vmul.f32 1.442695, %v284_v49  ;;  %v315_v63 = vmul.f32 1.442695, %v285_v51 }
  0x20   : > { %800 = vpow2.f32 %v297_v43  ;;  %v317_v0 = vmul.f32 1.442695, %v286_v52  ;;  %v906_v1 = vunpack.c.0.s8 %v347_v56  ;;  %v910_v3 = vunpack.c.1.s8 %v347_v56 }
  0x21   : > { %v898_v54 = vpop.eup %790  ;;  %802 = vpow2.f32 %v299_v45  ;;  %v912_v4 = vunpack.c.2.s8 %v347_v56  ;;  %v914_v5 = vunpack.c.3.s8 %v347_v56 }
  0x22   : > { %v900_v57 = vpop.eup %792  ;;  %804 = vpow2.f32 %v301_v47  ;;  %vm376_vm0 = vcmp.eq.s32.totalorder %v906_v1, 0  ;;  %vm377_vm1 = vcmp.eq.s32.totalorder %v910_v3, 0  ;;  %vm380_vm4 = vcmp.eq.s32.totalorder %v906_v1, 1 }
  0x23   : > { %v902_v59 = vpop.eup %794  ;;  %806 = vpow2.f32 %v303_v50  ;;  %vm378_vm2 = vcmp.eq.s32.totalorder %v912_v4, 0  ;;  %vm379_vm3 = vcmp.eq.s32.totalorder %v914_v5, 0  ;;  %vm381_vm5 = vcmp.eq.s32.totalorder %v910_v3, 1 }
  0x24   : > { %v904_v62 = vpop.eup %796  ;;  %808 = vpow2.f32 %v305_v53  ;;  %vm382_vm6 = vcmp.eq.s32.totalorder %v912_v4, 1  ;;  %vm383_vm7 = vcmp.eq.s32.totalorder %v914_v5, 1  ;;  %vm384_vm8 = vcmp.eq.s32.totalorder %v906_v1, 2 }
  0x25   : > { %v908_v2 = vpop.eup %798  ;;  %810 = vpow2.f32 %v307_v55  ;;  %vm385_vm9 = vcmp.eq.s32.totalorder %v910_v3, 2  ;;  %vm386_vm10 = vcmp.eq.s32.totalorder %v912_v4, 2  ;;  %vm387_vm11 = vcmp.eq.s32.totalorder %v914_v5, 2 }
  0x26   : > { %v916_v6 = vpop.eup %800  ;;  %812 = vpow2.f32 %v309_v58  ;;  %v319_v7 = vadd.f32 %v908_v2, %v898_v54  ;;  %vm388_vm12 = vcmp.eq.s32.totalorder %v906_v1, 3  ;;  %vm389_vm13 = vcmp.eq.s32.totalorder %v910_v3, 3 }
  0x27   : > { %v921_v8 = vpop.eup %802  ;;  %814 = vpow2.f32 %v311_v60  ;;  %v322_v9 = vadd.f32 %v916_v6, %v900_v57  ;;  %vm390_vm14 = vcmp.eq.s32.totalorder %v912_v4, 3  ;;  %v958_v21 = vsel %vm376_vm0, 1.0, %v854_v20 }
  0x28   : > { %v927_v10 = vpop.eup %804  ;;  %816 = vpow2.f32 %v313_v61  ;;  %v325_v11 = vadd.f32 %v921_v8, %v902_v59  ;;  %v965_v24 = vsel %vm377_vm1, 1.0, %v854_v20  ;;  %v969_v25 = vsel %vm378_vm2, 1.0, %v854_v20 }
  0x29   : > { %v934_v12 = vpop.eup %806  ;;  %818 = vpow2.f32 %v315_v63  ;;  %v328_v13 = vadd.f32 %v927_v10, %v904_v62  ;;  %v973_v26 = vsel %vm380_vm4, 1.0, %v854_v20  ;;  %v980_v29 = vsel %vm381_vm5, 1.0, %v854_v20 }
  0x2a   : > { %v940_v14 = vpop.eup %808  ;;  %820 = vpow2.f32 %v317_v0  ;;  %v320_v15 = vadd.f32 %v934_v12, %v319_v7  ;;  %v984_v30 = vsel %vm382_vm6, 1.0, %v854_v20  ;;  %v988_v31 = vsel %vm384_vm8, 1.0, %v854_v20 }
  0x2b   : > { %v945_v16 = vpop.eup %810  ;;  %v323_v17 = vadd.f32 %v940_v14, %v322_v9  ;;  %v995_v34 = vsel %vm385_vm9, 1.0, %v854_v20  ;;  %v999_v35 = vsel %vm386_vm10, 1.0, %v854_v20  ;;  %v1003_v36 = vsel %vm388_vm12, 1.0, %v854_v20 }
  0x2c   : > { %v951_v18 = vpop.eup %812  ;;  %v326_v19 = vadd.f32 %v945_v16, %v325_v11  ;;  %v492_v39 = vadd.f32 %v965_v24, %v958_v21  ;;  %v495_v40 = vadd.f32 %v980_v29, %v973_v26  ;;  %v1015_v42 = vsel %vm389_vm13, 1.0, %v854_v20 }
  0x2d   : > { %v960_v22 = vpop.eup %814  ;;  %v329_v23 = vadd.f32 %v951_v18, %v328_v13  ;;  %v498_v43 = vadd.f32 %v995_v34, %v988_v31  ;;  %v501_v46 = vadd.f32 %v1015_v42, %v1003_v36  ;;  %v1025_v47 = vsel %vm379_vm3, 1.0, %v854_v20 }
  0x2e   : > { %v975_v27 = vpop.eup %816  ;;  %v321_v28 = vadd.f32 %v960_v22, %v320_v15  ;;  %v493_v44 = vadd.f32 %v969_v25, %v492_v39  ;;  %v496_v45 = vadd.f32 %v984_v30, %v495_v40  ;;  %v1029_v48 = vsel %vm383_vm7, 1.0, %v854_v20 }
  0x2f   : > { %v990_v32 = vpop.eup %818  ;;  %v324_v33 = vadd.f32 %v975_v27, %v323_v17  ;;  %v499_v49 = vadd.f32 %v999_v35, %v498_v43  ;;  %v1034_v50 = vsel %vm387_vm11, 1.0, %v854_v20  ;;  %v1038_v51 = vsel %vm390_vm14, 1.0, %v854_v20 }
  0x30   : > { %v1005_v37 = vpop.eup %820  ;;  %v327_v38 = vadd.f32 %v990_v32, %v326_v19  ;;  %822 = vrcp.f32 %v321_v28  ;;  %v494_v52 = vadd.f32 %v1025_v47, %v493_v44  ;;  %v497_v53 = vadd.f32 %v1029_v48, %v496_v45 }
  0x31   : > { %v330_v41 = vadd.f32 %v1005_v37, %v329_v23  ;;  %824 = vrcp.f32 %v324_v33  ;;  %vm391_vm15 = vcmp.eq.s32.totalorder %v914_v5, 3  ;;  %v500_v55 = vadd.f32 %v1034_v50, %v499_v49 }
  0x32   : > { %826 = vrcp.f32 %v327_v38  ;;  %v502_v56 = vadd.f32 %v1038_v51, %v501_v46  ;;  %v601_v60 = vrot.slane %v494_v52, 4  ;;  %v607_v61 = vrot.slane %v497_v53, 4 }
  0x33   : > { %828 = vrcp.f32 %v330_v41  ;;  %vm352_vm0 = vcmp.lt.s32.totalorder %v906_v1, 4  ;;  %vm353_vm1 = vcmp.lt.s32.totalorder %v910_v3, 4  ;;  %v613_v7 = vrot.slane %v500_v55, 4 }
  0x34   : > { %v761_v13 = vsel %vm391_vm15, 1.0, %v854_v20  ;;  %v602_v15 = vadd.f32 %v601_v60, %v494_v52  ;;  %v608_v17 = vadd.f32 %v607_v61, %v497_v53  ;;  %vm354_vm2 = vcmp.lt.s32.totalorder %v912_v4, 4 }
  0x35   : > { %v1047_v40 = vadd.f32 %v761_v13, %v502_v56  ;;  %v1049_v43 = vadd.f32 %v613_v7, %v500_v55  ;;  %vm355_vm3 = vcmp.lt.s32.totalorder %v914_v5, 4  ;;  %vm547_vm4 = vcmask 1041409  }
  0x36   : > { %v823_v58 = vpop.eup %822  ;;  %vm549_vm5 = vcmask 1042434   ;;  %vm551_vm6 = vcmask 1043459   ;;  %vm554_vm7 = vcmask 1043456   ;;  %vm636_vm8 = vcmask 7168  }
  0x37   : > { %v825_v63 = vpop.eup %824  ;;  %v335_v0 = vmul.f32 %v823_v58, %v321_v28  ;;  %v603_v28 = vrot.slane %v602_v15, 2  ;;  %v619_v60 = vrot.slane %v1047_v40, 4  ;;  %vm638_vm9 = vcmask 15360  }
  0x38   : > { %v827_v9 = vpop.eup %826  ;;  %v336_v11 = vmul.f32 %v825_v63, %v324_v33  ;;  %v609_v33 = vrot.slane %v608_v17, 2  ;;  %vm640_vm10 = vcmask 19456  }
  0x39   : > { %v829_v19 = vpop.eup %828  ;;  %v337_v23 = vmul.f32 %v827_v9, %v327_v38  ;;  %v339_v39 = vsub.f32 2.0, %v335_v0  ;;  %v1053_v53 = vadd.f32 %v603_v28, %v602_v15  ;;  %v615_v38 = vrot.slane %v1049_v43, 2 }
  0x3a   : > { %v338_v44 = vmul.f32 %v829_v19, %v330_v41  ;;  %v340_v45 = vsub.f32 2.0, %v336_v11  ;;  %v1058_v41 = vadd.f32 %v609_v33, %v608_v17 }
  0x3b   : > { %v341_v46 = vsub.f32 2.0, %v337_v23  ;;  %v343_v49 = vmul.f32 %v823_v58, %v339_v39 }
  0x3c   : > { %v342_v20 = vsub.f32 2.0, %v338_v44  ;;  %v344_v52 = vmul.f32 %v825_v63, %v340_v45 }
  0x3d   : > { %v345_v56 = vmul.f32 %v827_v9, %v341_v46  ;;  %v356_v55 = vsel %vm352_vm0, %v343_v49, 0.0 }
  0x3e   : > { %v346_v61 = vmul.f32 %v829_v19, %v342_v20  ;;  %v357_v58 = vsel %vm353_vm1, %v344_v52, 0.0  ;;  %v360_v0 = vmul.f32 %v898_v54, %v356_v55  ;;  %v364_v63 = vmul.f32 %v908_v2, %v356_v55 }
  0x3f   : > { %v358_v7 = vsel %vm354_vm2, %v345_v56, 0.0  ;;  %v361_v9 = vmul.f32 %v900_v57, %v357_v58  ;;  %v365_v1 = vmul.f32 %v916_v6, %v357_v58  ;;  %v368_v11 = vmul.f32 %v934_v12, %v356_v55 }
  0x40   : > { %v359_v15 = vsel %vm355_vm3, %v346_v61, 0.0  ;;  %v362_v17 = vmul.f32 %v902_v59, %v358_v7  ;;  %v366_v3 = vmul.f32 %v921_v8, %v358_v7  ;;  %v369_v54 = vmul.f32 %v940_v14, %v357_v58 }
  0x41   : > { %v363_v2 = vmul.f32 %v904_v62, %v359_v15  ;;  %v367_v4 = vmul.f32 %v927_v10, %v359_v15  ;;  %v370_v19 = vmul.f32 %v945_v16, %v358_v7  ;;  %v371_v57 = vmul.f32 %v951_v18, %v359_v15 }
  0x42   : > { %v372_v6 = vmul.f32 %v960_v22, %v356_v55  ;;  %v373_v12 = vmul.f32 %v975_v27, %v357_v58  ;;  %v374_v5 = vmul.f32 %v990_v32, %v358_v7  ;;  %v375_v59 = vmul.f32 %v1005_v37, %v359_v15 }
  0x43   : > { %v428_v8 = vmul.f32 %v958_v21, %v360_v0  ;;  %v429_v14 = vmul.f32 %v965_v24, %v361_v9  ;;  %v430_v62 = vmul.f32 %v969_v25, %v362_v17  ;;  %v431_v10 = vmul.f32 %v1025_v47, %v363_v2 }
  0x44   : > { %v432_v16 = vmul.f32 %v973_v26, %v364_v63  ;;  %v433_v18 = vmul.f32 %v980_v29, %v365_v1  ;;  %v434_v22 = vmul.f32 %v984_v30, %v366_v3  ;;  %v435_v27 = vmul.f32 %v1029_v48, %v367_v4 }
  0x45   : > { %v436_v32 = vmul.f32 %v988_v31, %v368_v11  ;;  %v437_v37 = vmul.f32 %v995_v34, %v369_v54  ;;  %v438_v21 = vmul.f32 %v999_v35, %v370_v19  ;;  %v439_v24 = vmul.f32 %v1034_v50, %v371_v57 }
  0x46   : > { %v440_v25 = vmul.f32 %v1003_v36, %v372_v6  ;;  %v441_v47 = vmul.f32 %v1015_v42, %v373_v12  ;;  %v442_v26 = vmul.f32 %v1038_v51, %v374_v5  ;;  %v443_v23 = vmul.f32 %v761_v13, %v375_v59 }
  0x47   : > { %v444_v29 = vadd.f32 %v429_v14, %v428_v8  ;;  %v447_v39 = vadd.f32 %v433_v18, %v432_v16  ;;  %v450_v30 = vadd.f32 %v437_v37, %v436_v32  ;;  %v468_v44 = vadd.f32 %v361_v9, %v360_v0 }
  0x48   : > { %v453_v48 = vadd.f32 %v441_v47, %v440_v25  ;;  %v471_v45 = vadd.f32 %v365_v1, %v364_v63  ;;  %v474_v31 = vadd.f32 %v369_v54, %v368_v11  ;;  %v477_v28 = vadd.f32 %v373_v12, %v372_v6 }
  0x49   : > { %v445_v34 = vadd.f32 %v444_v29, %v430_v62  ;;  %v448_v46 = vadd.f32 %v447_v39, %v434_v22  ;;  %v451_v35 = vadd.f32 %v450_v30, %v438_v21  ;;  %v469_v49 = vadd.f32 %v468_v44, %v362_v17 }
  0x4a   : > { %v454_v50 = vadd.f32 %v453_v48, %v442_v26  ;;  %v472_v33 = vadd.f32 %v471_v45, %v366_v3  ;;  %v475_v36 = vadd.f32 %v474_v31, %v370_v19  ;;  %v478_v20 = vadd.f32 %v477_v28, %v374_v5 }
  0x4b   : > { %v446_v42 = vadd.f32 %v445_v34, %v431_v10  ;;  %v449_v52 = vadd.f32 %v448_v46, %v435_v27  ;;  %v452_v51 = vadd.f32 %v451_v35, %v439_v24  ;;  %v470_v13 = vadd.f32 %v469_v49, %v363_v2 }
  0x4c   : > { %v455_v56 = vadd.f32 %v454_v50, %v443_v23  ;;  %v473_v55 = vadd.f32 %v472_v33, %v367_v4  ;;  %v476_v61 = vadd.f32 %v475_v36, %v371_v57  ;;  %v479_v58 = vadd.f32 %v478_v20, %v375_v59 }
  0x4d   : > { %v519_v0 = vrot.slane %v446_v42, 4  ;;  %v525_v63 = vrot.slane %v449_v52, 4  ;;  %v531_v7 = vrot.slane %v452_v51, 4  ;;  %v562_v9 = vrot.slane %v470_v13, 4 }
  0x4e   : > { %v537_v1 = vrot.slane %v455_v56, 4  ;;  %v568_v11 = vrot.slane %v473_v55, 4  ;;  %v574_v15 = vrot.slane %v476_v61, 4  ;;  %v580_v17 = vrot.slane %v479_v58, 4 }
  0x4f   : > { %v520_v3 = vadd.f32 %v519_v0, %v446_v42  ;;  %v526_v54 = vadd.f32 %v525_v63, %v449_v52  ;;  %v532_v19 = vadd.f32 %v531_v7, %v452_v51  ;;  %v563_v6 = vadd.f32 %v562_v9, %v470_v13 }
  0x50   : > { %v538_v12 = vadd.f32 %v537_v1, %v455_v56  ;;  %v569_v2 = vadd.f32 %v568_v11, %v473_v55  ;;  %v575_v4 = vadd.f32 %v574_v15, %v476_v61  ;;  %v581_v57 = vadd.f32 %v580_v17, %v479_v58 }
  0x51   : > { %v521_v5 = vrot.slane %v520_v3, 2  ;;  %v527_v59 = vrot.slane %v526_v54, 2  ;;  %v533_v8 = vrot.slane %v532_v19, 2  ;;  %v564_v14 = vrot.slane %v563_v6, 2 }
  0x52   : > { %v539_v62 = vrot.slane %v538_v12, 2  ;;  %v570_v10 = vrot.slane %v569_v2, 2  ;;  %v576_v16 = vrot.slane %v575_v4, 2  ;;  %v582_v18 = vrot.slane %v581_v57, 2 }
  0x53   : > { %v522_v22 = vadd.f32 %v521_v5, %v520_v3  ;;  %v528_v27 = vadd.f32 %v527_v59, %v526_v54  ;;  %v534_v32 = vadd.f32 %v533_v8, %v532_v19  ;;  %v565_v37 = vadd.f32 %v564_v14, %v563_v6 }
  0x54   : > { %v540_v21 = vadd.f32 %v539_v62, %v538_v12  ;;  %v571_v24 = vadd.f32 %v570_v10, %v569_v2  ;;  %v577_v25 = vadd.f32 %v576_v16, %v575_v4  ;;  %v583_v47 = vadd.f32 %v582_v18, %v581_v57 }
  0x55   : > { %v523_v26 = vrot.slane %v522_v22, 1  ;;  %v529_v23 = vrot.slane %v528_v27, 1  ;;  %v535_v29 = vrot.slane %v534_v32, 1  ;;  %v566_v39 = vrot.slane %v565_v37, 1 }
  0x56   : > { %v541_v30 = vrot.slane %v540_v21, 1  ;;  %v572_v44 = vrot.slane %v571_v24, 1  ;;  %v578_v48 = vrot.slane %v577_v25, 1  ;;  %v584_v45 = vrot.slane %v583_v47, 1 }
  0x57   : > { %v524_v31 = vadd.f32 %v523_v26, %v522_v22  ;;  %v530_v28 = vadd.f32 %v529_v23, %v528_v27  ;;  %v536_v34 = vadd.f32 %v535_v29, %v534_v32  ;;  %v567_v46 = vadd.f32 %v566_v39, %v565_v37 }
  0x58   : > { %v542_v35 = vadd.f32 %v541_v30, %v540_v21  ;;  %v573_v49 = vadd.f32 %v572_v44, %v571_v24  ;;  %v579_v50 = vadd.f32 %v578_v48, %v577_v25  ;;  %v605_v36 = vrot.slane %v1053_v53, 1 }
  0x59   : > { %v548_v33 = vsel %vm547_vm4, %v530_v28, %v524_v31  ;;  %v611_v20 = vrot.slane %v1058_v41, 1  ;;  %v616_v42 = vadd.f32 %v615_v38, %v1049_v43  ;;  %v620_v13 = vadd.f32 %v619_v60, %v1047_v40 }
  0x5a   : > { %v550_v52 = vsel %vm549_vm5, %v536_v34, %v548_v33  ;;  %v590_v51 = vsel %vm547_vm4, %v573_v49, %v567_v46  ;;  %v585_v55 = vadd.f32 %v584_v45, %v583_v47  ;;  %v606_v61 = vadd.f32 %v605_v36, %v1053_v53 }
  0x5b   : > { %v552_v56 = vsel %vm551_vm6, %v542_v35, %v550_v52  ;;  %v612_v58 = vadd.f32 %v611_v20, %v1058_v41  ;;  %v591_v63 = vsel %vm549_vm5, %v579_v50, %v590_v51  ;;  %v617_v43 = vrot.slane %v616_v42, 1 }
  0x5c   : > { %v555_v0 = vsel %vm554_vm7, %v552_v56, 0.0  ;;  %v621_v38 = vrot.slane %v620_v13, 2  ;;  %v592_v40 = vsel %vm551_vm6, %v585_v55, %v591_v63 }
  0x5d   : > { %556 = vadd.xlane.f32.xlu0 %v555_v0  ;;  %v618_v7 = vadd.f32 %v617_v43, %v616_v42  ;;  %v629_v1 = vsel %vm547_vm4, %v612_v58, %v606_v61  ;;  %v594_v53 = vsel %vm554_vm7, %v592_v40, 0.0 }
  0x5e   : > { %v622_v9 = vadd.f32 %v621_v38, %v620_v13 }
  0x5f   : > { %v630_v11 = vsel %vm549_vm5, %v618_v7, %v629_v1 }
  0x60   : > { %v623_v60 = vrot.slane %v622_v9, 1 }
  0x62   : > { %v624_v41 = vadd.f32 %v623_v60, %v622_v9 }
  0x64   : > { %v631_v15 = vsel %vm551_vm6, %v624_v41, %v630_v11 }
  0x65   : > { %595 = vadd.xlane.f32.xlu0 %v594_v53  ;;  %v633_v17 = vsel %vm554_vm7, %v631_v15, 0.0 }
  0x66   : > { %634 = vadd.xlane.f32.xlu1 %v633_v17 }
  0xd0   : > { %v557_v3 = vpop.xlane.xlu0 %556 }
  0xd8   : > { %v596_v54 = vpop.xlane.xlu0 %595 }
  0xd9   : > { %v637_v19 = vsel %vm636_vm8, %v557_v3, %v596_v54  ;;  %v635_v6 = vpop.xlane.xlu1 %634 }
  0xda   : > { %v639_v12 = vsel %vm638_vm9, %v637_v19, %v635_v6 }
  0xdb   : > { %641 = vst.msk [vmem:[%s226_s24] sm:$0xf] %vm640_vm10, %v639_v12 }
  0xdc PF: > { %s12_s11 = sadd.s32 1, %s852_s11   ;;  %s1136_s9 = smov %s848_s10 }
  0xdd   : > { %p9_p5 = scmp.ge.s32.totalorder %s12_s11, 4   ;;  %s1137_s10 = smov %s1139_s12 }
  0xdf   :  { %11 = sbr.rel (!%p9_p5) target bundleno = 2 (0x2), region = 69 }

</bundles_post_ra>
